<compile_context>
chip_gen: v7x
topology: tpu7x:2x2x1
jax: 0.10.0
libtpu: 0.0.40
codegen_flags: <defaults>
</compile_context>

<pallas_src>
import math

import jax
import jax.numpy as jnp
from jax.experimental import pallas as pl
from jax.experimental.pallas import tpu as pltpu

# ------------------------- model hyper-parameters -------------------------
HIDDEN = 32
NUM_HEADS = 4
HEAD_DIM = HIDDEN // NUM_HEADS
INTERMEDIATE = 4 * HIDDEN
SEQ = 8
BATCH = 2
LN_EPS = 1e-5  # torch.nn.LayerNorm default

# ----------------------- packed parameter slab layout -----------------------
LANE = 128  # lane width of the packed slab (>= every parameter's column count)

_PARAM_LAYOUT = [
    # (name, rows, cols)
    ("ln1g", 1, HIDDEN), ("ln1b", 1, HIDDEN),
    ("wqkv", HIDDEN, 3 * HIDDEN), ("bqkv", 1, 3 * HIDDEN),
    ("wo", HIDDEN, HIDDEN), ("bo", 1, HIDDEN),
    ("ln2g", 1, HIDDEN), ("ln2b", 1, HIDDEN),
    ("w1", HIDDEN, INTERMEDIATE), ("b1", 1, INTERMEDIATE),
    ("w2", INTERMEDIATE, HIDDEN), ("b2", 1, HIDDEN),
]


def _ceil8(n):
    return ((n + 7) // 8) * 8


def _compute_offsets():
    offs = {}
    row = 0
    for name, rows, cols in _PARAM_LAYOUT:
        offs[name] = (row, rows, cols)
        row += _ceil8(rows)          # keep every section sublane-tile aligned
    return offs, row


_OFFS, _TOTAL_ROWS = _compute_offsets()


def _p(ref, name):
    """Static, tile-aligned slice of the packed parameter slab."""
    off, rows, cols = _OFFS[name]
    return ref[off:off + rows, :cols]


# ------------------------------ kernel math --------------------------------
def _layernorm(x, gamma, beta):
    # x: (N, H); gamma/beta: (1, H) — f32 elementwise (biased variance, like torch)
    mean = jnp.mean(x, axis=-1, keepdims=True)
    var = jnp.mean((x - mean) ** 2, axis=-1, keepdims=True)
    return (x - mean) * jax.lax.rsqrt(var + LN_EPS) * gamma + beta


def _new_gelu(x):
    # 0.5 * x * (1 + tanh(sqrt(2/pi) * (x + 0.044715 * x^3)))
    c = math.sqrt(2.0 / math.pi)
    return 0.5 * x * (1.0 + jnp.tanh(c * (x + 0.044715 * x * x * x)))


def block_kernel(x_ref, p_ref, o_ref):
    BS, H = x_ref.shape                        # (B*S, H) = (16, 32)
    B = BS // SEQ
    d = HEAD_DIM
    G = B * NUM_HEADS

    x = x_ref[...]                             # (BS, H)

    # ---- parameter views from the single packed slab ----
    ln1g, ln1b = _p(p_ref, "ln1g"), _p(p_ref, "ln1b")
    wqkv, bqkv = _p(p_ref, "wqkv"), _p(p_ref, "bqkv")
    wo, bo = _p(p_ref, "wo"), _p(p_ref, "bo")
    ln2g, ln2b = _p(p_ref, "ln2g"), _p(p_ref, "ln2b")
    w1, b1 = _p(p_ref, "w1"), _p(p_ref, "b1")
    w2, b2 = _p(p_ref, "w2"), _p(p_ref, "b2")

    # ---- LayerNorm 1 ----
    h = _layernorm(x, ln1g, ln1b)                                        # (BS, H)

    # ---- fused QKV projection: one wide matmul (scale folded into Q cols) ----
    qkv = jnp.dot(h, wqkv, preferred_element_type=jnp.float32) + bqkv    # (BS, 3H)

    # ---- slice head chunks off the 96-lane result into a (G, S, d) batch ----
    def split_heads(col0):
        chunks = [
            qkv[:, col0 + n * d: col0 + (n + 1) * d].reshape(B, SEQ, d)  # (B,S,d)
            for n in range(NUM_HEADS)
        ]
        # stack -> (NH, B, S, d); merge leading dims -> (G, S, d)
        return jnp.stack(chunks, axis=0).reshape(G, SEQ, d)

    q = split_heads(0)            # already scaled by 1/sqrt(d) via weight folding
    k = split_heads(HIDDEN)
    v = split_heads(2 * HIDDEN)

    # ---- batched per-head scaled dot-product attention ----
    scores = jnp.einsum('gqd,gkd->gqk', q, k,
                        preferred_element_type=jnp.float32)              # (G,S,S)
    scores = scores - jnp.max(scores, axis=-1, keepdims=True)
    e = jnp.exp(scores)
    probs = e / jnp.sum(e, axis=-1, keepdims=True)      # exact softmax (no approx)
    # attn_dropout: identity (eval)
    attn = jnp.einsum('gqk,gkd->gqd', probs, v,
                      preferred_element_type=jnp.float32)                # (G,S,d)

    # ---- reassemble heads into the lane dim, single output-projection matmul ----
    attn3 = attn.reshape(NUM_HEADS, BS, d)                               # free reshape
    attn2d = jnp.concatenate([attn3[n] for n in range(NUM_HEADS)],
                             axis=-1)                                    # (BS, H)
    y = jnp.dot(attn2d, wo, preferred_element_type=jnp.float32) + bo
    # output_dropout: identity (eval)
    x1 = x + y                                                           # (BS, H)

    # ---- LayerNorm 2 + MLP (NewGELU) + residual ----
    h2 = _layernorm(x1, ln2g, ln2b)
    m = jnp.dot(h2, w1, preferred_element_type=jnp.float32) + b1         # (BS, I)
    m = _new_gelu(m)
    m = jnp.dot(m, w2, preferred_element_type=jnp.float32) + b2          # (BS, H)
    # mlp dropout: identity (eval)

    # single full-block store
    o_ref[...] = x1 + m


# ------------------------ wrapper-side parameter prep -----------------------
def pack_params(params):
    """One-time (hoisted) host/XLA-side prep: fold 1/sqrt(head_dim) into the Q
    weights/bias and pack every parameter into a single tile-aligned VMEM slab."""
    (ln1g, ln1b, wqkv, bqkv, wo, bo, ln2g, ln2b, w1, b1, w2, b2) = params
    scale = 1.0 / math.sqrt(HEAD_DIM)
    wqkv = wqkv.at[:, :HIDDEN].multiply(scale)
    bqkv = bqkv.at[:, :HIDDEN].multiply(scale)

    tensors = {"ln1g": ln1g, "ln1b": ln1b, "wqkv": wqkv, "bqkv": bqkv,
               "wo": wo, "bo": bo, "ln2g": ln2g, "ln2b": ln2b,
               "w1": w1, "b1": b1, "w2": w2, "b2": b2}

    slab = jnp.zeros((_TOTAL_ROWS, LANE), jnp.float32)
    for name, rows, cols in _PARAM_LAYOUT:
        off = _OFFS[name][0]
        slab = slab.at[off:off + rows, :cols].set(
            tensors[name].reshape(rows, cols).astype(jnp.float32))
    return slab


# ------------------------------ wrapper ------------------------------------
@jax.jit
def block_forward(x, packed_params):
    B, S, H = x.shape
    x2d = x.reshape(B * S, H)                     # contiguous, free reshape
    vmem = lambda: pl.BlockSpec(memory_space=pltpu.MemorySpace.VMEM)

    out2d = pl.pallas_call(
        block_kernel,
        out_shape=jax.ShapeDtypeStruct((B * S, H), x.dtype),
        in_specs=[vmem(), vmem()],                # just 2 input DMAs: x + param slab
        out_specs=vmem(),
    )(x2d, packed_params)
    return out2d.reshape(B, S, H)


# --------------------------- pure-JAX reference -----------------------------
def block_reference(x, params):
    (ln1g, ln1b, wqkv, bqkv, wo, bo, ln2g, ln2b, w1, b1, w2, b2) = params

    def ln(v, g, b):
        mu = jnp.mean(v, axis=-1, keepdims=True)
        var = jnp.mean((v - mu) ** 2, axis=-1, keepdims=True)
        return (v - mu) / jnp.sqrt(var + LN_EPS) * g + b

    h = ln(x, ln1g, ln1b)
    qkv = h @ wqkv + bqkv
    q, k, v = jnp.split(qkv, 3, axis=-1)
    B, S, _ = x.shape

    def heads(t):
        return t.reshape(B, S, NUM_HEADS, HEAD_DIM).transpose(0, 2, 1, 3)

    q, k, v = heads(q), heads(k), heads(v)
    scores = jnp.einsum("bhqd,bhkd->bhqk", q, k) / math.sqrt(HEAD_DIM)
    probs = jax.nn.softmax(scores, axis=-1)
    attn = jnp.einsum("bhqk,bhkd->bhqd", probs, v)
    attn = attn.transpose(0, 2, 1, 3).reshape(B, S, HIDDEN)
    attn = attn @ wo + bo
    x1 = x + attn

    h2 = ln(x1, ln2g, ln2b)
    m = h2 @ w1 + b1
    c = math.sqrt(2.0 / math.pi)
    m = 0.5 * m * (1.0 + jnp.tanh(c * (m + 0.044715 * m ** 3)))
    m = m @ w2 + b2
    return x1 + m


# ------------------------------- main ---------------------------------------
if __name__ == "__main__":
    key = jax.random.PRNGKey(0)
    keys = jax.random.split(key, 16)

    x = jax.random.normal(keys[0], (BATCH, SEQ, HIDDEN), dtype=jnp.float32)

    # deterministic synthetic parameters (shapes per the module __init__;
    # Linear weights pre-transposed to (in_features, out_features))
    s = 0.05
    ln1g = jnp.ones((1, HIDDEN), jnp.float32)
    ln1b = jnp.zeros((1, HIDDEN), jnp.float32)
    wqkv = s * jax.random.normal(keys[1], (HIDDEN, 3 * HIDDEN), jnp.float32)
    bqkv = s * jax.random.normal(keys[2], (1, 3 * HIDDEN), jnp.float32)
    wo = s * jax.random.normal(keys[3], (HIDDEN, HIDDEN), jnp.float32)
    bo = s * jax.random.normal(keys[4], (1, HIDDEN), jnp.float32)
    ln2g = jnp.ones((1, HIDDEN), jnp.float32)
    ln2b = jnp.zeros((1, HIDDEN), jnp.float32)
    w1 = s * jax.random.normal(keys[5], (HIDDEN, INTERMEDIATE), jnp.float32)
    b1 = s * jax.random.normal(keys[6], (1, INTERMEDIATE), jnp.float32)
    w2 = s * jax.random.normal(keys[7], (INTERMEDIATE, HIDDEN), jnp.float32)
    b2 = s * jax.random.normal(keys[8], (1, HIDDEN), jnp.float32)

    params = (ln1g, ln1b, wqkv, bqkv, wo, bo, ln2g, ln2b, w1, b1, w2, b2)

    # parameter packing hoisted out of the per-call path (done once)
    packed = jax.block_until_ready(pack_params(params))

    out = block_forward(x, packed)
    out = jax.block_until_ready(out)

    ref = block_reference(x, params)
    assert out.shape == (BATCH, SEQ, HIDDEN)
    max_err = jnp.max(jnp.abs(out - ref))
    # tolerance covers XLA default-precision f32 matmuls in the reference path
    assert jnp.allclose(out, ref, atol=2e-3, rtol=2e-3), f"max abs err = {max_err}"

    print("KERNEL_OK")
</pallas_src>

<mosaic_0001>
module attributes {stable_mosaic.version = 11 : i64} {
  func.func @block_kernel(%arg0: memref<16x32xf32, #tpu.memory_space<vmem>>, %arg1: memref<288x128xf32, #tpu.memory_space<vmem>>, %arg2: memref<16x32xf32, #tpu.memory_space<vmem>>) attributes {dimension_semantics = [], scalar_prefetch = 0 : i64, scratch_operands = 0 : i64, tpu.core_type = #tpu.core_type<tc>} {
    %c0 = arith.constant 0 : index
    %c0_0 = arith.constant 0 : index
    %0 = vector.load %arg0[%c0, %c0_0] : memref<16x32xf32, #tpu.memory_space<vmem>>, vector<16x32xf32>
    %c0_1 = arith.constant 0 : index
    %c0_2 = arith.constant 0 : index
    %1 = vector.load %arg1[%c0_1, %c0_2] : memref<288x128xf32, #tpu.memory_space<vmem>>, vector<1x32xf32>
    %c8 = arith.constant 8 : index
    %c0_3 = arith.constant 0 : index
    %2 = vector.load %arg1[%c8, %c0_3] : memref<288x128xf32, #tpu.memory_space<vmem>>, vector<1x32xf32>
    %c16 = arith.constant 16 : index
    %c0_4 = arith.constant 0 : index
    %3 = vector.load %arg1[%c16, %c0_4] : memref<288x128xf32, #tpu.memory_space<vmem>>, vector<32x96xf32>
    %c48 = arith.constant 48 : index
    %c0_5 = arith.constant 0 : index
    %4 = vector.load %arg1[%c48, %c0_5] : memref<288x128xf32, #tpu.memory_space<vmem>>, vector<1x96xf32>
    %c56 = arith.constant 56 : index
    %c0_6 = arith.constant 0 : index
    %5 = vector.load %arg1[%c56, %c0_6] : memref<288x128xf32, #tpu.memory_space<vmem>>, vector<32x32xf32>
    %c88 = arith.constant 88 : index
    %c0_7 = arith.constant 0 : index
    %6 = vector.load %arg1[%c88, %c0_7] : memref<288x128xf32, #tpu.memory_space<vmem>>, vector<1x32xf32>
    %c96 = arith.constant 96 : index
    %c0_8 = arith.constant 0 : index
    %7 = vector.load %arg1[%c96, %c0_8] : memref<288x128xf32, #tpu.memory_space<vmem>>, vector<1x32xf32>
    %c104 = arith.constant 104 : index
    %c0_9 = arith.constant 0 : index
    %8 = vector.load %arg1[%c104, %c0_9] : memref<288x128xf32, #tpu.memory_space<vmem>>, vector<1x32xf32>
    %c112 = arith.constant 112 : index
    %c0_10 = arith.constant 0 : index
    %9 = vector.load %arg1[%c112, %c0_10] : memref<288x128xf32, #tpu.memory_space<vmem>>, vector<32x128xf32>
    %c144 = arith.constant 144 : index
    %c0_11 = arith.constant 0 : index
    %10 = vector.load %arg1[%c144, %c0_11] : memref<288x128xf32, #tpu.memory_space<vmem>>, vector<1x128xf32>
    %c152 = arith.constant 152 : index
    %c0_12 = arith.constant 0 : index
    %11 = vector.load %arg1[%c152, %c0_12] : memref<288x128xf32, #tpu.memory_space<vmem>>, vector<128x32xf32>
    %c280 = arith.constant 280 : index
    %c0_13 = arith.constant 0 : index
    %12 = vector.load %arg1[%c280, %c0_13] : memref<288x128xf32, #tpu.memory_space<vmem>>, vector<1x32xf32>
    %cst = arith.constant dense<0.000000e+00> : vector<16xf32>
    %13 = vector.multi_reduction <add>, %0, %cst [1] : vector<16x32xf32> to vector<16xf32>
    %14 = vector.shape_cast %13 : vector<16xf32> to vector<16x1xf32>
    %cst_14 = arith.constant 3.200000e+01 : f32
    %15 = vector.broadcast %cst_14 : f32 to vector<16x1xf32>
    %16 = arith.divf %14, %15 : vector<16x1xf32>
    %17 = vector.broadcast %16 : vector<16x1xf32> to vector<16x32xf32>
    %18 = arith.subf %0, %17 : vector<16x32xf32>
    %19 = arith.mulf %18, %18 : vector<16x32xf32>
    %cst_15 = arith.constant dense<0.000000e+00> : vector<16xf32>
    %20 = vector.multi_reduction <add>, %19, %cst_15 [1] : vector<16x32xf32> to vector<16xf32>
    %21 = vector.shape_cast %20 : vector<16xf32> to vector<16x1xf32>
    %cst_16 = arith.constant 3.200000e+01 : f32
    %22 = vector.broadcast %cst_16 : f32 to vector<16x1xf32>
    %23 = arith.divf %21, %22 : vector<16x1xf32>
    %24 = vector.broadcast %16 : vector<16x1xf32> to vector<16x32xf32>
    %25 = arith.subf %0, %24 : vector<16x32xf32>
    %cst_17 = arith.constant 9.99999974E-6 : f32
    %26 = vector.broadcast %cst_17 : f32 to vector<16x1xf32>
    %27 = arith.addf %23, %26 : vector<16x1xf32>
    %28 = math.rsqrt %27 : vector<16x1xf32>
    %29 = vector.broadcast %28 : vector<16x1xf32> to vector<16x32xf32>
    %30 = arith.mulf %25, %29 : vector<16x32xf32>
    %31 = vector.broadcast %1 : vector<1x32xf32> to vector<16x32xf32>
    %32 = arith.mulf %30, %31 : vector<16x32xf32>
    %33 = vector.broadcast %2 : vector<1x32xf32> to vector<16x32xf32>
    %34 = arith.addf %32, %33 : vector<16x32xf32>
    %cst_18 = arith.constant dense<0.000000e+00> : vector<16x96xf32>
    %35 = tpu.matmul %34, %3, %cst_18 {dimension_numbers = #tpu.dot_dimension_numbers<[1], [0], [0], [1], [0, 0, 1, 1], [], []>} : vector<16x32xf32>, vector<32x96xf32>, vector<16x96xf32> -> vector<16x96xf32>
    %36 = vector.broadcast %4 : vector<1x96xf32> to vector<16x96xf32>
    %37 = arith.addf %35, %36 : vector<16x96xf32>
    %38 = vector.extract_strided_slice %37 {offsets = [0, 0], sizes = [16, 8], strides = [1, 1]} : vector<16x96xf32> to vector<16x8xf32>
    %39 = vector.shape_cast %38 : vector<16x8xf32> to vector<2x8x8xf32>
    %40 = vector.extract_strided_slice %37 {offsets = [0, 8], sizes = [16, 8], strides = [1, 1]} : vector<16x96xf32> to vector<16x8xf32>
    %41 = vector.shape_cast %40 : vector<16x8xf32> to vector<2x8x8xf32>
    %42 = vector.extract_strided_slice %37 {offsets = [0, 16], sizes = [16, 8], strides = [1, 1]} : vector<16x96xf32> to vector<16x8xf32>
    %43 = vector.shape_cast %42 : vector<16x8xf32> to vector<2x8x8xf32>
    %44 = vector.extract_strided_slice %37 {offsets = [0, 24], sizes = [16, 8], strides = [1, 1]} : vector<16x96xf32> to vector<16x8xf32>
    %45 = vector.shape_cast %44 : vector<16x8xf32> to vector<2x8x8xf32>
    %46 = vector.shape_cast %39 : vector<2x8x8xf32> to vector<1x2x8x8xf32>
    %47 = vector.shape_cast %41 : vector<2x8x8xf32> to vector<1x2x8x8xf32>
    %48 = vector.shape_cast %43 : vector<2x8x8xf32> to vector<1x2x8x8xf32>
    %49 = vector.shape_cast %45 : vector<2x8x8xf32> to vector<1x2x8x8xf32>
    %50 = tpu.concatenate %46, %47, %48, %49 in 0 : vector<1x2x8x8xf32>, vector<1x2x8x8xf32>, vector<1x2x8x8xf32>, vector<1x2x8x8xf32> -> vector<4x2x8x8xf32>
    %51 = vector.shape_cast %50 : vector<4x2x8x8xf32> to vector<8x8x8xf32>
    %52 = vector.extract_strided_slice %37 {offsets = [0, 32], sizes = [16, 8], strides = [1, 1]} : vector<16x96xf32> to vector<16x8xf32>
    %53 = vector.shape_cast %52 : vector<16x8xf32> to vector<2x8x8xf32>
    %54 = vector.extract_strided_slice %37 {offsets = [0, 40], sizes = [16, 8], strides = [1, 1]} : vector<16x96xf32> to vector<16x8xf32>
    %55 = vector.shape_cast %54 : vector<16x8xf32> to vector<2x8x8xf32>
    %56 = vector.extract_strided_slice %37 {offsets = [0, 48], sizes = [16, 8], strides = [1, 1]} : vector<16x96xf32> to vector<16x8xf32>
    %57 = vector.shape_cast %56 : vector<16x8xf32> to vector<2x8x8xf32>
    %58 = vector.extract_strided_slice %37 {offsets = [0, 56], sizes = [16, 8], strides = [1, 1]} : vector<16x96xf32> to vector<16x8xf32>
    %59 = vector.shape_cast %58 : vector<16x8xf32> to vector<2x8x8xf32>
    %60 = vector.shape_cast %53 : vector<2x8x8xf32> to vector<1x2x8x8xf32>
    %61 = vector.shape_cast %55 : vector<2x8x8xf32> to vector<1x2x8x8xf32>
    %62 = vector.shape_cast %57 : vector<2x8x8xf32> to vector<1x2x8x8xf32>
    %63 = vector.shape_cast %59 : vector<2x8x8xf32> to vector<1x2x8x8xf32>
    %64 = tpu.concatenate %60, %61, %62, %63 in 0 : vector<1x2x8x8xf32>, vector<1x2x8x8xf32>, vector<1x2x8x8xf32>, vector<1x2x8x8xf32> -> vector<4x2x8x8xf32>
    %65 = vector.shape_cast %64 : vector<4x2x8x8xf32> to vector<8x8x8xf32>
    %66 = vector.extract_strided_slice %37 {offsets = [0, 64], sizes = [16, 8], strides = [1, 1]} : vector<16x96xf32> to vector<16x8xf32>
    %67 = vector.shape_cast %66 : vector<16x8xf32> to vector<2x8x8xf32>
    %68 = vector.extract_strided_slice %37 {offsets = [0, 72], sizes = [16, 8], strides = [1, 1]} : vector<16x96xf32> to vector<16x8xf32>
    %69 = vector.shape_cast %68 : vector<16x8xf32> to vector<2x8x8xf32>
    %70 = vector.extract_strided_slice %37 {offsets = [0, 80], sizes = [16, 8], strides = [1, 1]} : vector<16x96xf32> to vector<16x8xf32>
    %71 = vector.shape_cast %70 : vector<16x8xf32> to vector<2x8x8xf32>
    %72 = vector.extract_strided_slice %37 {offsets = [0, 88], sizes = [16, 8], strides = [1, 1]} : vector<16x96xf32> to vector<16x8xf32>
    %73 = vector.shape_cast %72 : vector<16x8xf32> to vector<2x8x8xf32>
    %74 = vector.shape_cast %67 : vector<2x8x8xf32> to vector<1x2x8x8xf32>
    %75 = vector.shape_cast %69 : vector<2x8x8xf32> to vector<1x2x8x8xf32>
    %76 = vector.shape_cast %71 : vector<2x8x8xf32> to vector<1x2x8x8xf32>
    %77 = vector.shape_cast %73 : vector<2x8x8xf32> to vector<1x2x8x8xf32>
    %78 = tpu.concatenate %74, %75, %76, %77 in 0 : vector<1x2x8x8xf32>, vector<1x2x8x8xf32>, vector<1x2x8x8xf32>, vector<1x2x8x8xf32> -> vector<4x2x8x8xf32>
    %79 = vector.shape_cast %78 : vector<4x2x8x8xf32> to vector<8x8x8xf32>
    "tpu.trace_start"() <{level = 10 : i32, message = "gqd,gkd->gqk"}> : () -> ()
    %cst_19 = arith.constant dense<0.000000e+00> : vector<8x8x8xf32>
    %80 = tpu.matmul %51, %65, %cst_19 {dimension_numbers = #tpu.dot_dimension_numbers<[2], [2], [1], [1], [0, 0, 0, 1, 1, 1], [0], [0]>} : vector<8x8x8xf32>, vector<8x8x8xf32>, vector<8x8x8xf32> -> vector<8x8x8xf32>
    "tpu.trace_stop"() : () -> ()
    %cst_20 = arith.constant dense<0xFF800000> : vector<8x8xf32>
    %81 = vector.multi_reduction <maximumf>, %80, %cst_20 [2] : vector<8x8x8xf32> to vector<8x8xf32>
    %82 = vector.shape_cast %81 : vector<8x8xf32> to vector<8x8x1xf32>
    %83 = vector.broadcast %82 : vector<8x8x1xf32> to vector<8x8x8xf32>
    %84 = arith.subf %80, %83 : vector<8x8x8xf32>
    %85 = math.exp %84 : vector<8x8x8xf32>
    %cst_21 = arith.constant dense<0.000000e+00> : vector<8x8xf32>
    %86 = vector.multi_reduction <add>, %85, %cst_21 [2] : vector<8x8x8xf32> to vector<8x8xf32>
    %87 = vector.shape_cast %86 : vector<8x8xf32> to vector<8x8x1xf32>
    %88 = vector.broadcast %87 : vector<8x8x1xf32> to vector<8x8x8xf32>
    %89 = arith.divf %85, %88 : vector<8x8x8xf32>
    "tpu.trace_start"() <{level = 10 : i32, message = "gqk,gkd->gqd"}> : () -> ()
    %cst_22 = arith.constant dense<0.000000e+00> : vector<8x8x8xf32>
    %90 = tpu.matmul %89, %79, %cst_22 {dimension_numbers = #tpu.dot_dimension_numbers<[2], [1], [1], [2], [0, 0, 0, 1, 1, 2], [0], [0]>} : vector<8x8x8xf32>, vector<8x8x8xf32>, vector<8x8x8xf32> -> vector<8x8x8xf32>
    "tpu.trace_stop"() : () -> ()
    %91 = vector.shape_cast %90 : vector<8x8x8xf32> to vector<4x16x8xf32>
    %92 = vector.extract_strided_slice %91 {offsets = [0, 0, 0], sizes = [1, 16, 8], strides = [1, 1, 1]} : vector<4x16x8xf32> to vector<1x16x8xf32>
    %93 = vector.shape_cast %92 : vector<1x16x8xf32> to vector<16x8xf32>
    %94 = vector.extract_strided_slice %91 {offsets = [1, 0, 0], sizes = [1, 16, 8], strides = [1, 1, 1]} : vector<4x16x8xf32> to vector<1x16x8xf32>
    %95 = vector.shape_cast %94 : vector<1x16x8xf32> to vector<16x8xf32>
    %96 = vector.extract_strided_slice %91 {offsets = [2, 0, 0], sizes = [1, 16, 8], strides = [1, 1, 1]} : vector<4x16x8xf32> to vector<1x16x8xf32>
    %97 = vector.shape_cast %96 : vector<1x16x8xf32> to vector<16x8xf32>
    %98 = vector.extract_strided_slice %91 {offsets = [3, 0, 0], sizes = [1, 16, 8], strides = [1, 1, 1]} : vector<4x16x8xf32> to vector<1x16x8xf32>
    %99 = vector.shape_cast %98 : vector<1x16x8xf32> to vector<16x8xf32>
    %100 = tpu.concatenate %93, %95, %97, %99 in 1 : vector<16x8xf32>, vector<16x8xf32>, vector<16x8xf32>, vector<16x8xf32> -> vector<16x32xf32>
    %cst_23 = arith.constant dense<0.000000e+00> : vector<16x32xf32>
    %101 = tpu.matmul %100, %5, %cst_23 {dimension_numbers = #tpu.dot_dimension_numbers<[1], [0], [0], [1], [0, 0, 1, 1], [], []>} : vector<16x32xf32>, vector<32x32xf32>, vector<16x32xf32> -> vector<16x32xf32>
    %102 = vector.broadcast %6 : vector<1x32xf32> to vector<16x32xf32>
    %103 = arith.addf %101, %102 : vector<16x32xf32>
    %104 = arith.addf %0, %103 : vector<16x32xf32>
    %cst_24 = arith.constant dense<0.000000e+00> : vector<16xf32>
    %105 = vector.multi_reduction <add>, %104, %cst_24 [1] : vector<16x32xf32> to vector<16xf32>
    %106 = vector.shape_cast %105 : vector<16xf32> to vector<16x1xf32>
    %cst_25 = arith.constant 3.200000e+01 : f32
    %107 = vector.broadcast %cst_25 : f32 to vector<16x1xf32>
    %108 = arith.divf %106, %107 : vector<16x1xf32>
    %109 = vector.broadcast %108 : vector<16x1xf32> to vector<16x32xf32>
    %110 = arith.subf %104, %109 : vector<16x32xf32>
    %111 = arith.mulf %110, %110 : vector<16x32xf32>
    %cst_26 = arith.constant dense<0.000000e+00> : vector<16xf32>
    %112 = vector.multi_reduction <add>, %111, %cst_26 [1] : vector<16x32xf32> to vector<16xf32>
    %113 = vector.shape_cast %112 : vector<16xf32> to vector<16x1xf32>
    %cst_27 = arith.constant 3.200000e+01 : f32
    %114 = vector.broadcast %cst_27 : f32 to vector<16x1xf32>
    %115 = arith.divf %113, %114 : vector<16x1xf32>
    %116 = vector.broadcast %108 : vector<16x1xf32> to vector<16x32xf32>
    %117 = arith.subf %104, %116 : vector<16x32xf32>
    %cst_28 = arith.constant 9.99999974E-6 : f32
    %118 = vector.broadcast %cst_28 : f32 to vector<16x1xf32>
    %119 = arith.addf %115, %118 : vector<16x1xf32>
    %120 = math.rsqrt %119 : vector<16x1xf32>
    %121 = vector.broadcast %120 : vector<16x1xf32> to vector<16x32xf32>
    %122 = arith.mulf %117, %121 : vector<16x32xf32>
    %123 = vector.broadcast %7 : vector<1x32xf32> to vector<16x32xf32>
    %124 = arith.mulf %122, %123 : vector<16x32xf32>
    %125 = vector.broadcast %8 : vector<1x32xf32> to vector<16x32xf32>
    %126 = arith.addf %124, %125 : vector<16x32xf32>
    %cst_29 = arith.constant dense<0.000000e+00> : vector<16x128xf32>
    %127 = tpu.matmul %126, %9, %cst_29 {dimension_numbers = #tpu.dot_dimension_numbers<[1], [0], [0], [1], [0, 0, 1, 1], [], []>} : vector<16x32xf32>, vector<32x128xf32>, vector<16x128xf32> -> vector<16x128xf32>
    %128 = vector.broadcast %10 : vector<1x128xf32> to vector<16x128xf32>
    %129 = arith.addf %127, %128 : vector<16x128xf32>
    %cst_30 = arith.constant 5.000000e-01 : f32
    %130 = vector.broadcast %cst_30 : f32 to vector<16x128xf32>
    %131 = arith.mulf %130, %129 : vector<16x128xf32>
    %cst_31 = arith.constant 4.471500e-02 : f32
    %132 = vector.broadcast %cst_31 : f32 to vector<16x128xf32>
    %133 = arith.mulf %132, %129 : vector<16x128xf32>
    %134 = arith.mulf %133, %129 : vector<16x128xf32>
    %135 = arith.mulf %134, %129 : vector<16x128xf32>
    %136 = arith.addf %129, %135 : vector<16x128xf32>
    %cst_32 = arith.constant 0.797884583 : f32
    %137 = vector.broadcast %cst_32 : f32 to vector<16x128xf32>
    %138 = arith.mulf %137, %136 : vector<16x128xf32>
    %139 = math.tanh %138 : vector<16x128xf32>
    %cst_33 = arith.constant 1.000000e+00 : f32
    %140 = vector.broadcast %cst_33 : f32 to vector<16x128xf32>
    %141 = arith.addf %140, %139 : vector<16x128xf32>
    %142 = arith.mulf %131, %141 : vector<16x128xf32>
    %cst_34 = arith.constant dense<0.000000e+00> : vector<16x32xf32>
    %143 = tpu.matmul %142, %11, %cst_34 {dimension_numbers = #tpu.dot_dimension_numbers<[1], [0], [0], [1], [0, 0, 1, 1], [], []>} : vector<16x128xf32>, vector<128x32xf32>, vector<16x32xf32> -> vector<16x32xf32>
    %144 = vector.broadcast %12 : vector<1x32xf32> to vector<16x32xf32>
    %145 = arith.addf %143, %144 : vector<16x32xf32>
    %146 = arith.addf %104, %145 : vector<16x32xf32>
    %c0_35 = arith.constant 0 : index
    %c0_36 = arith.constant 0 : index
    %147 = vector.load %arg2[%c0_35, %c0_36] : memref<16x32xf32, #tpu.memory_space<vmem>>, vector<16x32xf32>
    tpu.vector_store %arg2[%c0_35, %c0_36], %146 {strides = array<i32>} : memref<16x32xf32, #tpu.memory_space<vmem>>, vector<16x32xf32>,
    return
  }
}

</mosaic_0001>

<bundles_post_ra>
// kernel: block_forward.1
= control target key start
LH: loop header
LB: loop body
LE: loop exit
PB: predicated region body
PF: predicated region fallthrough
CT: control target
= control target key end

     0   :  { %7 = vsyncpa [#allocation3], 0  ;;  %s2595_s0 = inlined_call_operand.hbm [shape: f32[16,32], index: 0, kind: input, shape index: {}]   ;;  %s2596_s1 = inlined_call_operand.hbm [shape: f32[288,128], index: 1, kind: input, shape index: {}]   ;;  %s2597_s2 = inlined_call_operand.hbm [shape: f32[16,32], index: 2, kind: output, shape index: {}]  }
   0x1   :  { %8 = vsyncpa [#allocation6], 0 }
   0x2   :  { %9 = vsyncpa [#allocation4], 0  ;;  %s2323_s9 = smov [#allocation2]   ;;  %s2251_s13 = scalar_lea.hbm %s2595_s0, 256 }
   0x3   :  { %s15_s10 = sshll.u32 %s2323_s9, 4  ;;  %p2252_p0 = scmp.ne.s32.totalorder %s2595_s0, %s2251_s13  ;;  %s16_s10 = int_to_ptr.vmem [resolvable:$true] %s15_s10 }
   0x4   :  { %p2255_p1 = scmp.lt.u32.totalorder %s2251_s13, %s2595_s0 }
   0x6   :  { %p2257_p2 = pnand %p2255_p1, %p2252_p0 }
   0x8   :  { %2260 = shalt.err (!%p2257_p2)
}
   0x9   :  { %s2261_s18 = scalar_lea.vmem %s16_s10, 256  ;;  %p2266_p4 = scmp.lt.s32.totalorder %s16_s10, %s16_s10 }
   0xa   :  { %p2262_p3 = scmp.ne.s32.totalorder %s16_s10, %s2261_s18  ;;  %p2267_p5 = scmp.lt.s32.totalorder %s2261_s18, %s2261_s18 }
   0xc   :  { %p2268_p6 = por %p2267_p5, %p2266_p4 }
   0xe   :  { %p2269_p7 = pnand %p2268_p6, %p2262_p3 }
  0x10   :  { %2272 = shalt.err (!%p2269_p7)
}
  0x11   :  { %s2324_s19 = smov 128   ;;  %s2325_s20 = smov 8  }
  0x12   :  { %21 = dma.hbm_to_vmem [thread:$0]  %s2595_s0, 256, %s16_s10, [#allocation3], %s2324_s19, %s2324_s19, %s2325_s20  }
  0x13   :  { %s2326_s23 = smov [#allocation5]   ;;  %s2273_s27 = scalar_lea.hbm %s2596_s1, 4608 }
  0x14   :  { %s27_s24 = sshll.u32 %s2326_s23, 4  ;;  %p2274_p8 = scmp.ne.s32.totalorder %s2596_s1, %s2273_s27  ;;  %s28_s24 = int_to_ptr.vmem [resolvable:$true] %s27_s24 }
  0x15   :  { %p2277_p9 = scmp.lt.u32.totalorder %s2273_s27, %s2596_s1 }
  0x17   :  { %p2279_p10 = pnand %p2277_p9, %p2274_p8 }
  0x19   :  { %2282 = shalt.err (!%p2279_p10)
}
  0x1a   :  { %s2283_s4 = scalar_lea.vmem %s28_s24, 4608  ;;  %p2288_p12 = scmp.lt.s32.totalorder %s28_s24, %s28_s24 }
  0x1b   :  { %p2284_p11 = scmp.ne.s32.totalorder %s28_s24, %s2283_s4  ;;  %p2289_p13 = scmp.lt.s32.totalorder %s2283_s4, %s2283_s4 }
  0x1d   :  { %p2290_p0 = por %p2289_p13, %p2288_p12 }
  0x1f   :  { %p2291_p1 = pnand %p2290_p0, %p2284_p11 }
  0x21   :  { %2294 = shalt.err (!%p2291_p1)
}
  0x22   :  { %33 = dma.hbm_to_vmem [thread:$0]  %s2596_s1, 4608, %s28_s24, [#allocation6], %s2324_s19, %s2324_s19, %s2325_s20  }
  0x23   :  { %2317 = dma.done.wait [#allocation3], 256  }
  0x24   :  { %2318 = vsyncadd [#allocation3], 4294967040 }
  0x25   :  { %2319 = dma.done.wait [#allocation6], 4608  }
  0x26   :  { %2320 = vsyncadd [#allocation6], 4294962688  ;;  %vm78_vm0 = vcmask 261120   ;;  %v2382_v0 = vld [vmem:[#allocation2] sm:$0xff]  ;;  %v2384_v1 = vld [vmem:[#allocation2 + $0x8] sm:$0xff]  ;;  %v2327_v37 = vmov 0.0  }
  0x27   :  { %v79_v2 = vsel %vm78_vm0, %v2382_v0, 0.0  ;;  %v82_v3 = vsel %vm78_vm0, %v2384_v1, 0.0  ;;  %v44_v14 = vld [vmem:[#allocation5 + $0x10] sm:$0xff]  ;;  %v45_v15 = vld [vmem:[#allocation5 + $0x18] sm:$0xff]  ;;  %v46_v16 = vld [vmem:[#allocation5 + $0x20] sm:$0xff]  ;;  %2010 = vmatprep.subr.mxu0 %v2327_v37  ;;  %vm2328_vm1 = vmmov 0  }
  0x28   :  { %80 = vadd.xlane.f32.xlu0 %v79_v2  ;;  %v2137_v17 = vpack.c.bf16 %v45_v15, %v44_v14  ;;  %v47_v18 = vld [vmem:[#allocation5 + $0x28] sm:$0xff]  ;;  %v1883_v27 = vld [vmem:[#allocation5] ss:$0 sm:$0xff]  ;;  %v1885_v36 = vld [vmem:[#allocation5 + $0x30] ss:$0 sm:$0xff]  ;;  %2012 = vmatprep.mubr.msk.f32.mxu0 %vm2328_vm1, %v2327_v37  ;;  %s2329_s1 = smov 120  }
  0x29   :  { %v2141_v19 = vpack.c.bf16 %v47_v18, %v46_v16  ;;  %v1884_v29 = vld [vmem:[#allocation5 + $0x8] ss:$0 sm:$0xff]  ;;  %s2330_s6 = smov 112   ;;  %s2331_s7 = smov 104   ;;  %vm219_vm2 = vcmask 64512   ;;  %vm1548_vm3 = vcmask 130048  }
  0x2a   :  { %2138 = vmatprep.subr.bf16.mxu1 %v2137_v17  ;;  %s2332_s8 = smov 96   ;;  %s2333_s9 = smov 64   ;;  %vm1551_vm4 = vcmask 195584  }
  0x2b   :  { %2140 = vmatpush3.bf16.msra.mxu1 %v2137_v17  ;;  %s2334_s10 = smov 16   ;;  %s2335_s11 = smov 24  }
  0x2c   :  { %83 = vadd.xlane.f32.xlu0 %v82_v3  ;;  %2142 = vmatprep.subr.bf16.mxu1 %v2141_v19  ;;  %s2336_s12 = smov [#allocation7]  }
  0x2d   :  { %s1870_s13 = sshll.u32 %s2336_s12, 4  ;;  %s1871_s13 = int_to_ptr.vmem [resolvable:$true] %s1870_s13 }
  0x2e   :  { %s2295_s14 = scalar_lea.vmem %s1871_s13, 256  ;;  %p2300_p3 = scmp.lt.s32.totalorder %s1871_s13, %s1871_s13 }
  0x2f   :  { %2144 = vmatpush3.bf16.msra.mxu1 %v2141_v19  ;;  %p2296_p2 = scmp.ne.s32.totalorder %s1871_s13, %s2295_s14  ;;  %p2301_p4 = scmp.lt.s32.totalorder %s2295_s14, %s2295_s14 }
  0x30   :  { %2000 = vmatprep.subr.mxu1 %v2327_v37 }
  0x31   :  { %p2302_p5 = por %p2301_p4, %p2300_p3 }
  0x33   :  { %p2303_p6 = pnand %p2302_p5, %p2296_p2 }
  0xb5   :  { %v81_v4 = vpop.xlane.xlu0 %80 }
  0xb6   :  { %v86_v5 = vmul.f32 0.03125, %v81_v4 }
  0xb8   :  { %v88_v6 = vsub.f32 %v2382_v0, %v86_v5 }
  0xb9   :  { %v84_v7 = vpop.xlane.xlu0 %83 }
  0xba   :  { %v87_v8 = vmul.f32 0.03125, %v84_v7  ;;  %v90_v9 = vmul.f32 %v88_v6, %v88_v6 }
  0xbc   :  { %v89_v10 = vsub.f32 %v2384_v1, %v87_v8  ;;  %v92_v11 = vsel %vm78_vm0, %v90_v9, 0.0 }
  0xbd   :  { %93 = vadd.xlane.f32.xlu1 %v92_v11 }
  0xbe   :  { %v91_v12 = vmul.f32 %v89_v10, %v89_v10 }
  0xc0   :  { %v95_v13 = vsel %vm78_vm0, %v91_v12, 0.0 }
  0xc1   :  { %96 = vadd.xlane.f32.xlu1 %v95_v13 }
 0x14a   :  { %v94_v20 = vpop.xlane.xlu1 %93 }
 0x14b   :  { %v98_v21 = vmul.f32 0.03125, %v94_v20 }
 0x14d   :  { %v100_v22 = vadd.f32 1e-05, %v98_v21 }
 0x14e   :  { %v97_v23 = vpop.xlane.xlu1 %96 }
 0x14f   :  { %2207 = vrsqrt.f32 %v100_v22  ;;  %v99_v24 = vmul.f32 0.03125, %v97_v23 }
 0x151   :  { %v101_v25 = vadd.f32 1e-05, %v99_v24 }
 0x153   :  { %2209 = vrsqrt.f32 %v101_v25 }
 0x159   :  { %v2208_v26 = vpop.eup %2207 }
 0x15a   :  { %v104_v28 = vmul.f32 %v2208_v26, %v88_v6 }
 0x15c   :  { %v110_v30 = vmul.f32 %v1883_v27, %v104_v28 }
 0x15d   :  { %v2210_v31 = vpop.eup %2209 }
 0x15e   :  { %v105_v32 = vmul.f32 %v2210_v31, %v89_v10  ;;  %v116_v33 = vadd.f32 %v1884_v29, %v110_v30 }
 0x160   :  { %v111_v34 = vmul.f32 %v1883_v27, %v105_v32  ;;  %1997 = vmatprep.mubr.msk.f32.mxu1 %vm78_vm0, %v116_v33 }
 0x162   :  { %v117_v35 = vadd.f32 %v1884_v29, %v111_v34 }
 0x164   :  { %1998 = vmatmul.mubr.msk.f32.vlgmr.msra.gmra.mrb[0].mxu1 %vm78_vm0, %v117_v35 }
 0x165   :  { %2002 = vmatprep.mubr.msk.f32.mxu1 %vm2328_vm1, %v2327_v37 }
 0x237   :  { %v1999_v38 = vpop.f32.mrb[0].mxu1 }
 0x238   :  { %v2402_v39 = vadd.f32 %v1999_v38, %v1885_v36  ;;  %v194_v40 = vpop.f32.mrb[1].mxu1 }
 0x239   :  { %v2404_v41 = vadd.f32 %v1885_v36, %v194_v40 }
 0x23a   :  { %207 = vrot.lane.b32.xlu1 %v2402_v39, %s2329_s1 }
 0x23b   :  { %205 = vrot.lane.b32.xlu0 %v2404_v41, %s2329_s1 }
 0x23e   :  { %209 = vrot.lane.b32.xlu1 %v2404_v41, %s2330_s6 }
 0x23f   :  { %213 = vrot.lane.b32.xlu0 %v2404_v41, %s2331_s7 }
 0x242   :  { %211 = vrot.lane.b32.xlu1 %v2402_v39, %s2330_s6 }
 0x243   :  { %217 = vrot.lane.b32.xlu0 %v2404_v41, %s2332_s8 }
 0x246   :  { %215 = vrot.lane.b32.xlu1 %v2402_v39, %s2331_s7 }
 0x24a   :  { %294 = vrot.lane.b32.xlu1 %v2402_v39, %s2332_s8 }
 0x2ac   :  { %v2414_v42 = vpop.permute.xlu1 %207 }
 0x2ad   :  { %446 = vrot.lane.b32.xlu1 %v2414_v42, %s2332_s8  ;;  %v2417_v43 = vpop.permute.xlu0 %205 }
 0x2ae   :  { %370 = vrot.lane.b32.xlu0 %v2417_v43, %s2332_s8 }
 0x2b0   :  { %v2420_v44 = vpop.permute.xlu1 %209 }
 0x2b1   :  { %v2422_v45 = vpop.permute.xlu0 %213 }
 0x2b2   :  { %522 = vrot.lane.b32.xlu0 %v2420_v44, %s2332_s8 }
 0x2b4   :  { %v2425_v46 = vpop.permute.xlu1 %211 }
 0x2b5   :  { %598 = vrot.lane.b32.xlu1 %v2425_v46, %s2332_s8  ;;  %v218_v47 = vpop.permute.xlu0 %217 }
 0x2b6   :  { %674 = vrot.lane.b32.xlu0 %v2422_v45, %s2332_s8  ;;  %2001 = vmatpush3.xpose.msk.msra.mxu1 %vm219_vm2, %v218_v47 }
 0x2b7   :  { %2005 = vmatprep.subr.mxu1 %v2327_v37 }
 0x2b8   :  { %v2431_v48 = vpop.permute.xlu1 %215 }
 0x2b9   :  { %750 = vrot.lane.b32.xlu1 %v2431_v48, %s2332_s8  ;;  %2003 = vmatmul.mubr.msk.f32.vlgmr.msra.gmra.mrb[2].mxu1 %vm219_vm2, %v2404_v41 }
 0x2ba   :  { %2007 = vmatprep.mubr.msk.f32.mxu1 %vm2328_vm1, %v2327_v37 }
 0x2bc   :  { %v295_v49 = vpop.permute.xlu1 %294 }
 0x2bd   :  { %2006 = vmatpush3.xpose.msk.msra.mxu1 %vm219_vm2, %v295_v49 }
 0x2be   :  { %2015 = vmatprep.subr.mxu1 %v2327_v37 }
 0x2c0   :  { %2008 = vmatmul.mubr.msk.f32.vlgmr.msra.gmra.mrb[4].mxu1 %vm219_vm2, %v2402_v39 }
 0x2c1   :  { %2017 = vmatprep.mubr.msk.f32.mxu1 %vm2328_vm1, %v2327_v37 }
 0x31f   :  { %v447_v50 = vpop.permute.xlu1 %446 }
 0x320   :  { %2016 = vmatpush3.xpose.msk.msra.mxu1 %vm219_vm2, %v447_v50  ;;  %v371_v51 = vpop.permute.xlu0 %370 }
 0x321   :  { %2011 = vmatpush3.xpose.msk.msra.mxu0 %vm219_vm2, %v371_v51  ;;  %2025 = vmatprep.subr.mxu1 %v2327_v37 }
 0x322   :  { %2020 = vmatprep.subr.mxu0 %v2327_v37 }
 0x323   :  { %2018 = vmatmul.mubr.msk.f32.vlgmr.msra.gmra.mrb[6].mxu1 %vm219_vm2, %v2414_v42 }
 0x324   :  { %2013 = vmatmul.mubr.msk.f32.vlgmr.msra.gmra.mrb[0].mxu0 %vm219_vm2, %v2417_v43  ;;  %v523_v52 = vpop.permute.xlu0 %522  ;;  %2027 = vmatprep.mubr.msk.f32.mxu1 %vm2328_vm1, %v2327_v37 }
 0x325   :  { %2021 = vmatpush3.xpose.msk.msra.mxu0 %vm219_vm2, %v523_v52  ;;  %2022 = vmatprep.mubr.msk.f32.mxu0 %vm2328_vm1, %v2327_v37 }
 0x326   :  { %2030 = vmatprep.subr.mxu0 %v2327_v37 }
 0x327   :  { %v599_v53 = vpop.permute.xlu1 %598 }
 0x328   :  { %2023 = vmatmul.mubr.msk.f32.vlgmr.msra.gmra.mrb[2].mxu0 %vm219_vm2, %v2420_v44  ;;  %2026 = vmatpush3.xpose.msk.msra.mxu1 %vm219_vm2, %v599_v53  ;;  %v675_v54 = vpop.permute.xlu0 %674 }
 0x329   :  { %2031 = vmatpush3.xpose.msk.msra.mxu0 %vm219_vm2, %v675_v54  ;;  %2032 = vmatprep.mubr.msk.f32.mxu0 %vm2328_vm1, %v2327_v37 }
 0x32a   :  { %2035 = vmatprep.subr.mxu1 %v2327_v37  ;;  %2040 = vmatprep.subr.mxu0 %v2327_v37 }
 0x32b   :  { %v751_v55 = vpop.permute.xlu1 %750  ;;  %2028 = vmatmul.mubr.msk.f32.vlgmr.msra.gmra.mrb[8].mxu1 %vm219_vm2, %v2425_v46 }
 0x32c   :  { %2033 = vmatmul.mubr.msk.f32.vlgmr.msra.gmra.mrb[4].mxu0 %vm219_vm2, %v2422_v45  ;;  %2036 = vmatpush3.xpose.msk.msra.mxu1 %vm219_vm2, %v751_v55 }
 0x32d   :  { %2037 = vmatprep.mubr.msk.f32.mxu1 %vm2328_vm1, %v2327_v37  ;;  %2045 = vmatprep.subr.mxu1 %v2327_v37 }
 0x32e   :  { %2042 = vmatprep.mubr.msk.f32.mxu0 %vm2328_vm1, %v2327_v37 }
 0x32f   :  { %2038 = vmatmul.mubr.msk.f32.vlgmr.msra.gmra.mrb[10].mxu1 %vm219_vm2, %v2431_v48 }
 0x330   :  { %2047 = vmatprep.mubr.msk.f32.mxu1 %vm2328_vm1, %v2327_v37 }
 0x38c   :  { %v290_v56 = vpop.f32.mrb[2].mxu1 }
 0x38d   :  { %v2004_v57 = vpop.f32.mrb[3].mxu1  ;;  %v826_v58 = vsel %vm219_vm2, %v290_v56, -inf }
 0x38e   :  { %827 = vmax.xlane.f32.xlu0 %v826_v58 }
 0x393   :  { %v366_v59 = vpop.f32.mrb[4].mxu1 }
 0x394   :  { %v2009_v60 = vpop.f32.mrb[5].mxu1  ;;  %v829_v61 = vsel %vm219_vm2, %v366_v59, -inf }
 0x395   :  { %830 = vmax.xlane.f32.xlu1 %v829_v61 }
 0x3f6   :  { %v518_v62 = vpop.f32.mrb[6].mxu1 }
 0x3f7   :  { %v442_v63 = vpop.f32.mrb[0].mxu0  ;;  %v2019_v2 = vpop.f32.mrb[7].mxu1  ;;  %v835_v3 = vsel %vm219_vm2, %v518_v62, -inf }
 0x3f8   :  { %836 = vmax.xlane.f32.xlu0 %v835_v3  ;;  %v2014_v4 = vpop.f32.mrb[1].mxu0  ;;  %v832_v6 = vsel %vm219_vm2, %v442_v63, -inf }
 0x3fb   :  { %v594_v5 = vpop.f32.mrb[2].mxu0 }
 0x3fc   :  { %833 = vmax.xlane.f32.xlu0 %v832_v6  ;;  %v2024_v7 = vpop.f32.mrb[3].mxu0  ;;  %v838_v12 = vsel %vm219_vm2, %v594_v5, -inf }
 0x3fe   :  { %v670_v8 = vpop.f32.mrb[8].mxu1 }
 0x3ff   :  { %v2029_v9 = vpop.f32.mrb[9].mxu1  ;;  %v746_v10 = vpop.f32.mrb[4].mxu0  ;;  %v841_v11 = vsel %vm219_vm2, %v670_v8, -inf }
 0x400   :  { %842 = vmax.xlane.f32.xlu1 %v841_v11  ;;  %839 = vmax.xlane.f32.xlu0 %v838_v12  ;;  %v2034_v13 = vpop.f32.mrb[5].mxu0  ;;  %v844_v17 = vsel %vm219_vm2, %v746_v10, -inf }
 0x402   :  { %v822_v14 = vpop.f32.mrb[10].mxu1 }
 0x403   :  { %v2039_v15 = vpop.f32.mrb[11].mxu1  ;;  %v847_v16 = vsel %vm219_vm2, %v822_v14, -inf }
 0x404   :  { %848 = vmax.xlane.f32.xlu1 %v847_v16  ;;  %845 = vmax.xlane.f32.xlu0 %v844_v17 }
 0x415   :  { %990 = vrot.lane.b32.xlu1 %v2402_v39, %s2333_s9 }
 0x419   :  { %1066 = vrot.lane.b32.xlu1 %v2417_v43, %s2333_s9 }
 0x41a   :  { %914 = vrot.lane.b32.xlu0 %v2404_v41, %s2333_s9 }
 0x41b   :  { %v828_v18 = vpop.xlane.xlu0 %827 }
 0x41c   :  { %v850_v19 = vsub.f32 %v290_v56, %v828_v18 }
 0x41d   :  { %1142 = vrot.lane.b32.xlu1 %v2414_v42, %s2333_s9 }
 0x41e   :  { %1218 = vrot.lane.b32.xlu0 %v2420_v44, %s2333_s9  ;;  %v858_v20 = vmul.f32 1.442695, %v850_v19 }
 0x420   :  { %2211 = vpow2.f32 %v858_v20 }
 0x421   :  { %1294 = vrot.lane.b32.xlu1 %v2425_v46, %s2333_s9 }
 0x422   :  { %v831_v21 = vpop.xlane.xlu1 %830 }
 0x423   :  { %v851_v22 = vsub.f32 %v366_v59, %v831_v21 }
 0x425   :  { %v860_v23 = vmul.f32 1.442695, %v851_v22 }
 0x427   :  { %2213 = vpow2.f32 %v860_v23 }
 0x42a   :  { %v2500_v24 = vpop.eup %2211 }
 0x42b   :  { %v874_v25 = vsel %vm219_vm2, %v2500_v24, 0.0 }
 0x431   :  { %v2504_v26 = vpop.eup %2213 }
 0x432   :  { %v877_v27 = vsel %vm219_vm2, %v2504_v26, 0.0 }
 0x43d   :  { %875 = vadd.xlane.f32.xlu0 %v874_v25 }
 0x445   :  { %878 = vadd.xlane.f32.xlu1 %v877_v27 }
 0x485   :  { %v837_v28 = vpop.xlane.xlu0 %836 }
 0x486   :  { %v853_v29 = vsub.f32 %v518_v62, %v837_v28 }
 0x488   :  { %v864_v30 = vmul.f32 1.442695, %v853_v29 }
 0x489   :  { %v834_v31 = vpop.xlane.xlu0 %833 }
 0x48a   :  { %2215 = vpow2.f32 %v864_v30  ;;  %v852_v32 = vsub.f32 %v442_v63, %v834_v31 }
 0x48c   :  { %v862_v33 = vmul.f32 1.442695, %v852_v32 }
 0x48d   :  { %v843_v34 = vpop.xlane.xlu1 %842  ;;  %v840_v35 = vpop.xlane.xlu0 %839 }
 0x48e   :  { %2217 = vpow2.f32 %v862_v33  ;;  %v855_v36 = vsub.f32 %v670_v8, %v843_v34  ;;  %v854_v38 = vsub.f32 %v594_v5, %v840_v35  ;;  %v49_v33 = vld [vmem:[#allocation5 + $0x38] sm:$0xff]  ;;  %v50_v34 = vld [vmem:[#allocation5 + $0x40] sm:$0xff] }
 0x48f   :  { %v2145_v35 = vpack.c.bf16 %v50_v34, %v49_v33  ;;  %v1915_v34 = vld [vmem:[#allocation5 + $0x60] ss:$0 sm:$0xff] }
 0x490   :  { %v868_v39 = vmul.f32 1.442695, %v855_v36  ;;  %v866_v40 = vmul.f32 1.442695, %v854_v38  ;;  %v51_v36 = vld [vmem:[#allocation5 + $0x48] sm:$0xff]  ;;  %v52_v38 = vld [vmem:[#allocation5 + $0x50] sm:$0xff] }
 0x491   :  { %v849_v41 = vpop.xlane.xlu1 %848  ;;  %v846_v42 = vpop.xlane.xlu0 %845 }
 0x492   :  { %2219 = vpow2.f32 %v868_v39  ;;  %v857_v43 = vsub.f32 %v822_v14, %v849_v41  ;;  %v856_v44 = vsub.f32 %v746_v10, %v846_v42  ;;  %v2149_v39 = vpack.c.bf16 %v52_v38, %v51_v36  ;;  %v1916_v36 = vld [vmem:[#allocation5 + $0x68] ss:$0 sm:$0xff] }
 0x493   :  { %2221 = vpow2.f32 %v866_v40 }
 0x494   :  { %v2216_v46 = vpop.eup %2215  ;;  %v872_v47 = vmul.f32 1.442695, %v857_v43  ;;  %v870_v49 = vmul.f32 1.442695, %v856_v44 }
 0x495   :  { %v991_v50 = vpop.permute.xlu1 %990  ;;  %v915_v51 = vpop.permute.xlu0 %914  ;;  %v883_v52 = vsel %vm219_vm2, %v2216_v46, 0.0 }
 0x496   :  { %2223 = vpow2.f32 %v872_v47  ;;  %2046 = vmatpush3.msra.mxu1 %v991_v50  ;;  %884 = vadd.xlane.f32.xlu1 %v883_v52 }
 0x497   :  { %2225 = vpow2.f32 %v870_v49  ;;  %2041 = vmatpush3.msra.mxu0 %v915_v51  ;;  %2055 = vmatprep.subr.mxu1 %v2327_v37 }
 0x498   :  { %v2218_v53 = vpop.eup %2217  ;;  %2050 = vmatprep.subr.mxu0 %v2327_v37 }
 0x499   :  { %v880_v54 = vsel %vm219_vm2, %v2218_v53, 0.0  ;;  %v1067_v63 = vpop.permute.xlu1 %1066  ;;  %v1219_v2 = vpop.permute.xlu0 %1218 }
 0x49a   :  { %881 = vadd.xlane.f32.xlu0 %v880_v54 }
 0x49c   :  { %v2220_v55 = vpop.eup %2219 }
 0x49d   :  { %v2222_v56 = vpop.eup %2221  ;;  %v889_v57 = vsel %vm219_vm2, %v2220_v55, 0.0  ;;  %v1143_v3 = vpop.permute.xlu1 %1142 }
 0x49e   :  { %890 = vadd.xlane.f32.xlu1 %v889_v57  ;;  %v886_v58 = vsel %vm219_vm2, %v2222_v56, 0.0 }
 0x49f   :  { %887 = vadd.xlane.f32.xlu0 %v886_v58 }
 0x4a0   :  { %v2514_v59 = vpop.eup %2223 }
 0x4a1   :  { %v2516_v60 = vpop.eup %2225  ;;  %v895_v61 = vsel %vm219_vm2, %v2514_v59, 0.0  ;;  %v1295_v5 = vpop.permute.xlu1 %1294 }
 0x4a2   :  { %896 = vadd.xlane.f32.xlu1 %v895_v61  ;;  %v892_v62 = vsel %vm219_vm2, %v2516_v60, 0.0 }
 0x4a3   :  { %893 = vadd.xlane.f32.xlu0 %v892_v62 }
 0x4b3   :  { %1446 = vrot.lane.b32.xlu1 %v2431_v48, %s2333_s9 }
 0x4b9   :  { %1370 = vrot.lane.b32.xlu0 %v2422_v45, %s2333_s9 }
 0x4ca   :  { %v876_v4 = vpop.xlane.xlu0 %875 }
 0x4cb   :  { %2227 = vrcp.f32 %v876_v4 }
 0x4d2   :  { %v879_v6 = vpop.xlane.xlu1 %878 }
 0x4d3   :  { %2229 = vrcp.f32 %v879_v6 }
 0x4d5   :  { %v2228_v7 = vpop.eup %2227 }
 0x4d6   :  { %v899_v8 = vmul.f32 %v2228_v7, %v2500_v24 }
 0x4d8   :  { %2043 = vmatmul.mubr.msk.f32.vlgmr.msra.gmra.mrb[6].mxu0 %vm219_vm2, %v899_v8 }
 0x4d9   :  { %2051 = vmatpush3.msra.mxu0 %v1067_v63  ;;  %2052 = vmatprep.mubr.msk.f32.mxu0 %vm2328_vm1, %v2327_v37 }
 0x4da   :  { %2060 = vmatprep.subr.mxu0 %v2327_v37 }
 0x4dd   :  { %v2230_v45 = vpop.eup %2229 }
 0x4de   :  { %v901_v48 = vmul.f32 %v2230_v45, %v2504_v26 }
 0x4e0   :  { %2048 = vmatmul.mubr.msk.f32.vlgmr.msra.gmra.mrb[12].mxu1 %vm219_vm2, %v901_v48 }
 0x4e1   :  { %2056 = vmatpush3.msra.mxu1 %v1143_v3  ;;  %2057 = vmatprep.mubr.msk.f32.mxu1 %vm2328_vm1, %v2327_v37  ;;  %v1912_v3 = vld [vmem:[#allocation5 + $0x58] ss:$0 sm:$0xff] }
 0x4e2   :  { %2065 = vmatprep.subr.mxu1 %v2327_v37 }
 0x523   :  { %v885_v9 = vpop.xlane.xlu1 %884 }
 0x524   :  { %2231 = vrcp.f32 %v885_v9 }
 0x527   :  { %v882_v10 = vpop.xlane.xlu0 %881 }
 0x528   :  { %2233 = vrcp.f32 %v882_v10 }
 0x52b   :  { %v891_v11 = vpop.xlane.xlu1 %890 }
 0x52c   :  { %2235 = vrcp.f32 %v891_v11  ;;  %v888_v12 = vpop.xlane.xlu0 %887 }
 0x52d   :  { %2237 = vrcp.f32 %v888_v12 }
 0x52e   :  { %v2232_v13 = vpop.eup %2231 }
 0x52f   :  { %v905_v14 = vmul.f32 %v2232_v13, %v2216_v46  ;;  %v897_v15 = vpop.xlane.xlu1 %896 }
 0x530   :  { %2239 = vrcp.f32 %v897_v15  ;;  %v894_v16 = vpop.xlane.xlu0 %893 }
 0x531   :  { %2241 = vrcp.f32 %v894_v16  ;;  %2058 = vmatmul.mubr.msk.f32.vlgmr.msra.gmra.mrb[14].mxu1 %vm219_vm2, %v905_v14 }
 0x532   :  { %v2234_v17 = vpop.eup %2233  ;;  %2066 = vmatpush3.msra.mxu1 %v1295_v5  ;;  %2067 = vmatprep.mubr.msk.f32.mxu1 %vm2328_vm1, %v2327_v37 }
 0x533   :  { %v903_v18 = vmul.f32 %v2234_v17, %v2218_v53  ;;  %2075 = vmatprep.subr.mxu1 %v2327_v37  ;;  %v1447_v23 = vpop.permute.xlu1 %1446 }
 0x534   :  { %v1371_v25 = vpop.permute.xlu0 %1370 }
 0x535   :  { %2053 = vmatmul.mubr.msk.f32.vlgmr.msra.gmra.mrb[8].mxu0 %vm219_vm2, %v903_v18  ;;  %v56_v18 = vld [vmem:[#allocation5 + $0x70] sm:$0xff] }
 0x536   :  { %v2236_v19 = vpop.eup %2235  ;;  %2061 = vmatpush3.msra.mxu0 %v1219_v2  ;;  %2062 = vmatprep.mubr.msk.f32.mxu0 %vm2328_vm1, %v2327_v37 }
 0x537   :  { %v2238_v20 = vpop.eup %2237  ;;  %v909_v21 = vmul.f32 %v2236_v19, %v2220_v55  ;;  %2070 = vmatprep.subr.mxu0 %v2327_v37  ;;  %v57_v19 = vld [vmem:[#allocation5 + $0x78] sm:$0xff] }
 0x538   :  { %v907_v22 = vmul.f32 %v2238_v20, %v2222_v56  ;;  %v2153_v20 = vpack.c.bf16 %v57_v19, %v56_v18 }
 0x539   :  { %2068 = vmatmul.mubr.msk.f32.vlgmr.msra.gmra.mrb[16].mxu1 %vm219_vm2, %v909_v21  ;;  %v58_v21 = vld [vmem:[#allocation5 + $0x80] sm:$0xff] }
 0x53a   :  { %v2240_v24 = vpop.eup %2239  ;;  %2063 = vmatmul.mubr.msk.f32.vlgmr.msra.gmra.mrb[10].mxu0 %vm219_vm2, %v907_v22  ;;  %2076 = vmatpush3.msra.mxu1 %v1447_v23  ;;  %v59_v22 = vld [vmem:[#allocation5 + $0x88] sm:$0xff] }
 0x53b   :  { %v2242_v26 = vpop.eup %2241  ;;  %v913_v27 = vmul.f32 %v2240_v24, %v2514_v59  ;;  %2071 = vmatpush3.msra.mxu0 %v1371_v25  ;;  %2072 = vmatprep.mubr.msk.f32.mxu0 %vm2328_vm1, %v2327_v37  ;;  %v2157_v23 = vpack.c.bf16 %v59_v22, %v58_v21  ;;  %v61_v24 = vld [vmem:[#allocation5 + $0x98] sm:$0xff]  ;;  %v62_v25 = vld [vmem:[#allocation5 + $0xa0] sm:$0xff] }
 0x53c   :  { %v911_v28 = vmul.f32 %v2242_v26, %v2516_v60  ;;  %2077 = vmatprep.mubr.msk.f32.mxu1 %vm2328_vm1, %v2327_v37  ;;  %2146 = vmatprep.subr.bf16.mxu1 %v2145_v35  ;;  %v2161_v26 = vpack.c.bf16 %v62_v25, %v61_v24  ;;  %v1920_v25 = vld [vmem:[#allocation5 + $0x118] ss:$0 sm:$0xff] }
 0x53d   :  { %2078 = vmatmul.mubr.msk.f32.vlgmr.msra.gmra.mrb[18].mxu1 %vm219_vm2, %v913_v27 }
 0x53e   :  { %2073 = vmatmul.mubr.msk.f32.vlgmr.msra.gmra.mrb[12].mxu0 %vm219_vm2, %v911_v28  ;;  %2148 = vmatpush3.bf16.msra.mxu1 %v2145_v35 }
 0x53f   :  { %2150 = vmatprep.subr.bf16.mxu1 %v2149_v39  ;;  %2162 = vmatprep.subr.bf16.mxu0 %v2161_v26 }
 0x540   :  { %2164 = vmatpush3.bf16.msra.mxu0 %v2161_v26 }
 0x542   :  { %2152 = vmatpush3.bf16.msra.mxu1 %v2149_v39 }
 0x543   :  { %2154 = vmatprep.subr.bf16.mxu1 %v2153_v20 }
 0x5ab   :  { %v986_v29 = vpop.f32.mrb[6].mxu0 }
 0x5ac   :  { %v2044_v30 = vpop.f32.mrb[7].mxu0 }
 0x5b3   :  { %v1062_v31 = vpop.f32.mrb[12].mxu1 }
 0x5b4   :  { %v2049_v32 = vpop.f32.mrb[13].mxu1 }
 0x604   :  { %v1214_v40 = vpop.f32.mrb[14].mxu1 }
 0x605   :  { %1526 = vrot.lane.b32.xlu1 %v1214_v40, %s2325_s20  ;;  %v2059_v37 = vpop.f32.mrb[15].mxu1 }
 0x608   :  { %v1138_v41 = vpop.f32.mrb[8].mxu0 }
 0x609   :  { %1524 = vrot.lane.b32.xlu0 %v1138_v41, %s2325_s20  ;;  %v2054_v42 = vpop.f32.mrb[9].mxu0 }
 0x60c   :  { %v1366_v43 = vpop.f32.mrb[16].mxu1 }
 0x60d   :  { %v1290_v44 = vpop.f32.mrb[10].mxu0  ;;  %1534 = vrot.lane.b32.xlu1 %v1366_v43, %s2334_s10  ;;  %v2069_v46 = vpop.f32.mrb[17].mxu1  ;;  %v63_v43 = vld [vmem:[#allocation5 + $0xa8] sm:$0xff] }
 0x60e   :  { %1532 = vrot.lane.b32.xlu0 %v1290_v44, %s2334_s10  ;;  %v2064_v47 = vpop.f32.mrb[11].mxu0  ;;  %v64_v44 = vld [vmem:[#allocation5 + $0xb0] sm:$0xff] }
 0x60f   :  { %v2165_v46 = vpack.c.bf16 %v64_v44, %v63_v43  ;;  %v65_v47 = vld [vmem:[#allocation5 + $0xb8] sm:$0xff] }
 0x610   :  { %v1518_v49 = vpop.f32.mrb[18].mxu1 }
 0x611   :  { %v1442_v50 = vpop.f32.mrb[12].mxu0  ;;  %1542 = vrot.lane.b32.xlu1 %v1518_v49, %s2335_s11  ;;  %v2079_v51 = vpop.f32.mrb[19].mxu1  ;;  %2166 = vmatprep.subr.bf16.mxu0 %v2165_v46  ;;  %v66_v49 = vld [vmem:[#allocation5 + $0xc0] sm:$0xff] }
 0x612   :  { %1540 = vrot.lane.b32.xlu0 %v1442_v50, %s2335_s11  ;;  %v2074_v52 = vpop.f32.mrb[13].mxu0  ;;  %2168 = vmatpush3.bf16.msra.mxu0 %v2165_v46  ;;  %v2169_v50 = vpack.c.bf16 %v66_v49, %v65_v47  ;;  %v67_v51 = vld [vmem:[#allocation5 + $0xc8] sm:$0xff] }
 0x613   :  { %v68_v52 = vld [vmem:[#allocation5 + $0xd0] sm:$0xff] }
 0x614   :  { %2170 = vmatprep.subr.bf16.mxu0 %v2169_v50 }
 0x616   :  { %2172 = vmatpush3.bf16.msra.mxu0 %v2169_v50 }
 0x677   :  { %v1527_v53 = vpop.permute.xlu1 %1526 }
 0x678   :  { %v1547_v57 = vsel %vm219_vm2, %v1062_v31, %v1527_v53  ;;  %v2173_v53 = vpack.c.bf16 %v68_v52, %v67_v51 }
 0x67a   :  { %2174 = vmatprep.subr.bf16.mxu0 %v2173_v53 }
 0x67b   :  { %v1525_v54 = vpop.permute.xlu0 %1524  ;;  %2176 = vmatpush3.bf16.msra.mxu0 %v2173_v53 }
 0x67c   :  { %v1546_v58 = vsel %vm219_vm2, %v986_v29, %v1525_v54  ;;  %v69_v54 = vld [vmem:[#allocation5 + $0xd8] sm:$0xff] }
 0x67f   :  { %v1535_v55 = vpop.permute.xlu1 %1534 }
 0x680   :  { %v1533_v56 = vpop.permute.xlu0 %1532  ;;  %v1550_v59 = vsel %vm1548_vm3, %v1547_v57, %v1535_v55  ;;  %v70_v55 = vld [vmem:[#allocation5 + $0xe0] sm:$0xff]  ;;  %v71_v57 = vld [vmem:[#allocation5 + $0xe8] sm:$0xff] }
 0x681   :  { %v1549_v61 = vsel %vm1548_vm3, %v1546_v58, %v1533_v56  ;;  %v2177_v56 = vpack.c.bf16 %v70_v55, %v69_v54  ;;  %v72_v58 = vld [vmem:[#allocation5 + $0xf0] sm:$0xff] }
 0x683   :  { %v1543_v60 = vpop.permute.xlu1 %1542  ;;  %2178 = vmatprep.subr.bf16.mxu0 %v2177_v56 }
 0x684   :  { %v1553_v62 = vsel %vm1551_vm4, %v1550_v59, %v1543_v60  ;;  %v1541_v63 = vpop.permute.xlu0 %1540  ;;  %v2181_v59 = vpack.c.bf16 %v72_v58, %v71_v57  ;;  %v73_v60 = vld [vmem:[#allocation5 + $0xf8] sm:$0xff]  ;;  %2180 = vmatpush3.bf16.msra.mxu0 %v2177_v56 }
 0x685   :  { %v1552_v2 = vsel %vm1551_vm4, %v1549_v61, %v1541_v63  ;;  %v74_v61 = vld [vmem:[#allocation5 + $0x100] sm:$0xff]  ;;  %v75_v63 = vld [vmem:[#allocation5 + $0x108] sm:$0xff] }
 0x686   :  { %2088 = vmatprep.mubr.msk.f32.mxu1 %vm78_vm0, %v1552_v2  ;;  %2182 = vmatprep.subr.bf16.mxu0 %v2181_v59  ;;  %v76_v2 = vld [vmem:[#allocation5 + $0x110] sm:$0xff] }
 0x687   :  { %2089 = vmatmul.mubr.msk.f32.vlgmr.msra.gmra.mrb[20].mxu1 %vm78_vm0, %v1553_v62  ;;  %v2185_v62 = vpack.c.bf16 %v74_v61, %v73_v60 }
 0x688   :  { %2156 = vmatpush3.bf16.msra.mxu1 %v2153_v20  ;;  %2184 = vmatpush3.bf16.msra.mxu0 %v2181_v59 }
 0x689   :  { %2158 = vmatprep.subr.bf16.mxu1 %v2157_v23  ;;  %2186 = vmatprep.subr.bf16.mxu0 %v2185_v62 }
 0x68c   :  { %2160 = vmatpush3.bf16.msra.mxu1 %v2157_v23  ;;  %2188 = vmatpush3.bf16.msra.mxu0 %v2185_v62 }
 0x75a   :  { %v2090_v4 = vpop.f32.mrb[20].mxu1 }
 0x75b   :  { %v1636_v5 = vadd.f32 %v2090_v4, %v1912_v3  ;;  %v1630_v6 = vpop.f32.mrb[21].mxu1  ;;  %v1917_v4 = vld [vmem:[#allocation5 + $0x90] ss:$0 sm:$0xff] }
 0x75c   :  { %v1631_v7 = vadd.f32 %v1912_v3, %v1630_v6  ;;  %v2189_v3 = vpack.c.bf16 %v76_v2, %v75_v63 }
 0x75d   :  { %v2561_v8 = vadd.f32 %v1636_v5, %v2384_v1 }
 0x75e   :  { %v2564_v45 = vadd.f32 %v1631_v7, %v2382_v0  ;;  %2190 = vmatprep.subr.bf16.mxu0 %v2189_v3 }
 0x75f   :  { %v1644_v48 = vsel %vm78_vm0, %v2561_v8, 0.0  ;;  %2192 = vmatpush3.bf16.msra.mxu0 %v2189_v3 }
 0x760   :  { %1645 = vadd.xlane.f32.xlu1 %v1644_v48  ;;  %v1641_v9 = vsel %vm78_vm0, %v2564_v45, 0.0 }
 0x761   :  { %1642 = vadd.xlane.f32.xlu0 %v1641_v9 }
 0x7ed   :  { %v1646_v10 = vpop.xlane.xlu1 %1645 }
 0x7ee   :  { %v1648_v11 = vmul.f32 0.03125, %v1646_v10  ;;  %v1643_v12 = vpop.xlane.xlu0 %1642 }
 0x7ef   :  { %v1647_v13 = vmul.f32 0.03125, %v1643_v12 }
 0x7f0   :  { %v1650_v14 = vsub.f32 %v2561_v8, %v1648_v11 }
 0x7f1   :  { %v1649_v1 = vsub.f32 %v2564_v45, %v1647_v13 }
 0x7f2   :  { %v1652_v16 = vmul.f32 %v1650_v14, %v1650_v14 }
 0x7f3   :  { %v1651_v15 = vmul.f32 %v1649_v1, %v1649_v1 }
 0x7f4   :  { %v1656_v17 = vsel %vm78_vm0, %v1652_v16, 0.0 }
 0x7f5   :  { %v1653_v0 = vsel %vm78_vm0, %v1651_v15, 0.0 }
 0x7f6   :  { %1654 = vadd.xlane.f32.xlu0 %v1653_v0 }
 0x7fa   :  { %1657 = vadd.xlane.f32.xlu0 %v1656_v17 }
 0x883   :  { %v1655_v27 = vpop.xlane.xlu0 %1654 }
 0x884   :  { %v1659_v28 = vmul.f32 0.03125, %v1655_v27 }
 0x886   :  { %v1661_v29 = vadd.f32 1e-05, %v1659_v28 }
 0x887   :  { %v1658_v30 = vpop.xlane.xlu0 %1657 }
 0x888   :  { %2243 = vrsqrt.f32 %v1661_v29  ;;  %v1660_v31 = vmul.f32 0.03125, %v1658_v30 }
 0x88a   :  { %v1662_v32 = vadd.f32 1e-05, %v1660_v31 }
 0x88c   :  { %2245 = vrsqrt.f32 %v1662_v32 }
 0x892   :  { %v2244_v33 = vpop.eup %2243 }
 0x893   :  { %v1665_v35 = vmul.f32 %v2244_v33, %v1649_v1 }
 0x895   :  { %v1671_v38 = vmul.f32 %v1915_v34, %v1665_v35 }
 0x896   :  { %v2246_v39 = vpop.eup %2245 }
 0x897   :  { %v1666_v40 = vmul.f32 %v2246_v39, %v1650_v14  ;;  %v1677_v37 = vadd.f32 %v1916_v36, %v1671_v38 }
 0x899   :  { %v1672_v41 = vmul.f32 %v1915_v34, %v1666_v40  ;;  %2099 = vmatprep.mubr.msk.f32.mxu1 %vm78_vm0, %v1677_v37 }
 0x89b   :  { %v1678_v42 = vadd.f32 %v1916_v36, %v1672_v41 }
 0x89d   :  { %2100 = vmatmul.mubr.msk.f32.vlgmr.msra.gmra.mrb[22].mxu1 %vm78_vm0, %v1678_v42 }
 0x970   :  { %v2101_v5 = vpop.f32.mrb[22].mxu1 }
 0x971   :  { %v1761_v6 = vadd.f32 %v2101_v5, %v1917_v4  ;;  %v1755_v7 = vpop.f32.mrb[23].mxu1 }
 0x972   :  { %v1756_v48 = vadd.f32 %v1917_v4, %v1755_v7 }
 0x973   :  { %v1767_v9 = vmul.f32 0.044715, %v1761_v6  ;;  %v1765_v22 = vmul.f32 0.5, %v1761_v6 }
 0x974   :  { %v1766_v10 = vmul.f32 0.044715, %v1756_v48  ;;  %v1764_v20 = vmul.f32 0.5, %v1756_v48 }
 0x975   :  { %v1769_v11 = vmul.f32 %v1767_v9, %v1761_v6 }
 0x976   :  { %v1768_v12 = vmul.f32 %v1766_v10, %v1756_v48 }
 0x977   :  { %v1771_v13 = vmul.f32 %v1769_v11, %v1761_v6 }
 0x978   :  { %v1770_v14 = vmul.f32 %v1768_v12, %v1756_v48 }
 0x979   :  { %v1773_v1 = vadd.f32 %v1771_v13, %v1761_v6 }
 0x97a   :  { %v1772_v15 = vadd.f32 %v1770_v14, %v1756_v48 }
 0x97b   :  { %v1775_v0 = vmul.f32 0.7978846, %v1773_v1 }
 0x97c   :  { %v1774_v16 = vmul.f32 0.7978846, %v1772_v15 }
 0x97d   :  { %2247 = vtanh.f32 %v1775_v0 }
 0x97e   :  { %2249 = vtanh.f32 %v1774_v16 }
 0x987   :  { %v2248_v17 = vpop.eup %2247 }
 0x988   :  { %v2250_v18 = vpop.eup %2249  ;;  %v1779_v19 = vadd.f32 1.0, %v2248_v17 }
 0x989   :  { %v1778_v21 = vadd.f32 1.0, %v2250_v18 }
 0x98a   :  { %v1781_v24 = vmul.f32 %v1779_v19, %v1765_v22 }
 0x98b   :  { %v1780_v23 = vmul.f32 %v1778_v21, %v1764_v20 }
 0x98d   :  { %2134 = vmatprep.mubr.f32.mxu0 %v1780_v23 }
 0x98e   :  { %2135 = vmatmul.mubr.f32.vlgmr.msra.gmra.mrb[14].mxu0 %v1781_v24 }
 0xa61   :  { %v2136_v26 = vpop.f32.mrb[14].mxu0 }
 0xa62   :  { %v1858_v27 = vadd.f32 %v2136_v26, %v1920_v25  ;;  %v1852_v28 = vpop.f32.mrb[15].mxu0 }
 0xa63   :  { %v1853_v29 = vadd.f32 %v1920_v25, %v1852_v28 }
 0xa64   :  { %v1862_v30 = vadd.f32 %v1858_v27, %v2561_v8 }
 0xa65   :  { %v1861_v31 = vadd.f32 %v1853_v29, %v2564_v45 }
 0xa66   :  { %1864 = vst.msk [vmem:[#allocation7 + $0x8] sm:$0xff] %vm78_vm0, %v1862_v30 }
 0xa67   :  { %1863 = vst.msk [vmem:[#allocation7] sm:$0xff] %vm78_vm0, %v1861_v31 }
 0xa68   :  { %2306 = shalt.err (!%p2303_p6)
}
 0xa69   :  { %s2307_s17 = scalar_lea.hbm %s2597_s2, 256 }
 0xa6a   :  { %p2308_p7 = scmp.ne.s32.totalorder %s2597_s2, %s2307_s17  ;;  %p2311_p8 = scmp.lt.u32.totalorder %s2307_s17, %s2597_s2 }
 0xa6c   :  { %p2313_p9 = pnand %p2311_p8, %p2308_p7 }
 0xa6e   :  { %2316 = shalt.err (!%p2313_p9)
}
 0xa6f   :  { %1876 = dma.vmem_to_hbm [thread:$0]  %s1871_s13, 256, %s2597_s2, [#allocation4], %s2324_s19, %s2324_s19, %s2325_s20  }
 0xa70   :  { %2321 = dma.done.wait [#allocation4], 256  }
 0xa71   :  { %2322 = vsyncadd [#allocation4], 4294967040 }
 0xa72   :  { %1880 = vsyncpa [#allocation3], 1 }
 0xa73   :  { %1881 = vsyncpa [#allocation6], 1 }
 0xa74   :  { %1882 = vsyncpa [#allocation4], 1 }

</bundles_post_ra>
